<compile_context>
chip_gen: v7x
topology: tpu7x:2x2x1
jax: 0.10.0
libtpu: 0.0.40
codegen_flags: <defaults>
</compile_context>

<pallas_src>
import jax
import jax.numpy as jnp
from jax.experimental import pallas as pl
from jax.experimental.pallas import tpu as pltpu


def _doc_classifier_kernel(p_ref, s_ref, e_ref, w_ref, b_ref, q_ref):
    # p_ref : (bd, SL)        extraction probabilities
    # s_ref : (bd, SL*SS)     lane-dense flattened sentences
    # e_ref : (SL, SL*SS)     expansion matrix, E[i, i*SS + c] = 1
    # w_ref : (SL*SS, NC)     tiled weight, W_rep[i*SS + c, k] = W[k, c]
    # b_ref : (1, NC)
    # q_ref : (bd, NC)
    p = p_ref[...].astype(jnp.float32)
    s = s_ref[...].astype(jnp.float32)
    e = e_ref[...].astype(jnp.float32)
    w = w_ref[...].astype(jnp.float32)
    b = b_ref[...].astype(jnp.float32)

    # Expand p along the lane axis with a tiny MXU matmul (no lane relayout):
    #   p_exp[d, i*SS + c] = p[d, i]
    p_exp = jnp.dot(p, e, preferred_element_type=jnp.float32)   # (bd, SL*SS)

    # Weighted sentences, full 128-lane vregs.
    ps = p_exp * s                                               # (bd, SL*SS)

    # sum_i p[d,i] * (s[d,i,:] @ W.T)  ==  ps @ W_rep   (single MXU pass)
    logit = jnp.dot(ps, w, preferred_element_type=jnp.float32)   # (bd, NC)

    # Fold the 1/sum(p) normalisation after the matmul; reciprocal -> EUP slot.
    p_total = jnp.sum(p, axis=1, keepdims=True)                  # (bd, 1)
    logit = logit * pl.reciprocal(p_total) + b

    q_ref[...] = jax.nn.sigmoid(logit)


def _choose_block(batch, block_docs):
    """Pick (block_docs, n_blocks): sublane-aligned, even block count if we can."""
    if batch <= block_docs:
        return batch, 1
    bd = max(8, (block_docs // 8) * 8)
    n = pl.cdiv(batch, bd)
    if n > 1 and n % 2 == 1:
        # Best effort: an even number of grid steps feeds both v7x TensorCores.
        bd_try = max(8, ((pl.cdiv(batch, n + 1) + 7) // 8) * 8)
        if pl.cdiv(batch, bd_try) % 2 == 0:
            bd = bd_try
            n = pl.cdiv(batch, bd)
    return bd, n


def document_classifier_forward_batched(p, s, weight, bias, *, block_docs=1024):
    """p: (B, seq_len), s: (B, seq_len, sent_size),
    weight: (n_classes, sent_size), bias: (n_classes,) -> q: (B, n_classes)"""
    B, seq_len = p.shape
    sent_size = s.shape[-1]
    n_classes = weight.shape[0]
    flat = seq_len * sent_size

    bd, n_blocks = _choose_block(B, block_docs)

    # Lane-dense layouts, all prepared with free/tiny host-side ops.
    s_flat = s.reshape(B, flat)                        # contiguous reshape, no copy
    w_rep = jnp.tile(weight.T.astype(jnp.float32), (seq_len, 1))   # (flat, NC)
    expand = jnp.repeat(jnp.eye(seq_len, dtype=jnp.float32),
                        sent_size, axis=1)             # (seq_len, flat)
    b2 = bias.reshape(1, n_classes).astype(jnp.float32)

    itemsize = jnp.dtype(s.dtype).itemsize
    cost = pl.CostEstimate(
        flops=2 * B * seq_len * flat            # p @ E
              + B * flat                        # p_exp * s
              + 2 * B * flat * n_classes        # ps @ W_rep
              + 3 * B * n_classes,              # scale + bias + sigmoid mul
        transcendentals=B * (n_classes + 1),    # sigmoid exps + reciprocal
        bytes_accessed=(B * flat + B * seq_len) * itemsize
                       + B * n_classes * 4
                       + (seq_len * flat + flat * n_classes + n_classes) * 4,
    )

    q = pl.pallas_call(
        _doc_classifier_kernel,
        out_shape=jax.ShapeDtypeStruct((B, n_classes), jnp.float32),
        grid=(n_blocks,),
        in_specs=[
            pl.BlockSpec((bd, seq_len), lambda i: (i, 0)),
            pl.BlockSpec((bd, flat), lambda i: (i, 0)),
            pl.BlockSpec((seq_len, flat), lambda i: (0, 0)),
            pl.BlockSpec((flat, n_classes), lambda i: (0, 0)),
            pl.BlockSpec((1, n_classes), lambda i: (0, 0)),
        ],
        # Ragged last block: out-of-bounds rows are never written back, so no
        # host-side padding copy of s is needed.
        out_specs=pl.BlockSpec((bd, n_classes), lambda i: (i, 0)),
        compiler_params=pltpu.CompilerParams(
            dimension_semantics=("parallel",),          # megacore split on v7x
            vmem_limit_bytes=32 * 1024 * 1024,          # raise v5e's 16 MiB default
        ),
        cost_estimate=cost,
    )(p, s_flat, expand, w_rep, b2)
    return q


def document_classifier_forward(p, s, weight, bias):
    """Single-document entry point matching the PyTorch module signature.
    p: (seq_len,), s: (seq_len, sent_size) -> q: (n_classes,)"""
    q = document_classifier_forward_batched(p[None], s[None], weight, bias)
    return q[0]


def _reference_single(p, s, weight, bias):
    s_avg = jnp.sum(p[:, None] * s, axis=0) / jnp.sum(p)
    logit = s_avg @ weight.T + bias
    return jax.nn.sigmoid(logit)


if __name__ == "__main__":
    seq_len = 8
    sent_size = 32
    n_classes = 4
    batch = 16

    key = jax.random.PRNGKey(0)
    k_p, k_s, k_w, k_b = jax.random.split(key, 4)

    # extraction probabilities in (0, 1)
    p_b = jax.nn.sigmoid(
        jax.random.normal(k_p, (batch, seq_len), dtype=jnp.float32))
    # encoded sentences
    s_b = jax.random.normal(k_s, (batch, seq_len, sent_size), dtype=jnp.float32)
    # deterministic Linear(sent_size, n_classes) params (PyTorch weight layout)
    bound = 1.0 / (sent_size ** 0.5)
    weight = jax.random.uniform(
        k_w, (n_classes, sent_size), minval=-bound, maxval=bound,
        dtype=jnp.float32)
    bias = jax.random.uniform(
        k_b, (n_classes,), minval=-bound, maxval=bound, dtype=jnp.float32)

    ref = jax.vmap(lambda p, s: _reference_single(p, s, weight, bias))

    # 1) Batched kernel run (single block: bd == batch).
    q_batched = document_classifier_forward_batched(p_b, s_b, weight, bias)
    jax.block_until_ready(q_batched)
    q_ref = ref(p_b, s_b)
    assert q_batched.shape == (batch, n_classes)
    assert jnp.allclose(q_batched, q_ref, atol=1e-5, rtol=1e-5), (q_batched, q_ref)

    # 2) Ragged multi-block run (no host-side padding; last block partially OOB).
    batch_r = 20
    k_p2, k_s2 = jax.random.split(jax.random.PRNGKey(1), 2)
    p_r = jax.nn.sigmoid(
        jax.random.normal(k_p2, (batch_r, seq_len), dtype=jnp.float32))
    s_r = jax.random.normal(k_s2, (batch_r, seq_len, sent_size), dtype=jnp.float32)
    q_ragged = document_classifier_forward_batched(
        p_r, s_r, weight, bias, block_docs=8)
    jax.block_until_ready(q_ragged)
    q_ref_r = ref(p_r, s_r)
    assert q_ragged.shape == (batch_r, n_classes)
    assert jnp.allclose(q_ragged, q_ref_r, atol=1e-5, rtol=1e-5), (q_ragged, q_ref_r)

    # 3) Single-document path (matches module signature exactly).
    q_single = document_classifier_forward(p_b[0], s_b[0], weight, bias)
    jax.block_until_ready(q_single)
    assert q_single.shape == (n_classes,)
    assert jnp.allclose(q_single, q_ref[0], atol=1e-5, rtol=1e-5), (q_single, q_ref[0])

    print("KERNEL_OK")
</pallas_src>

<mosaic_0001>
module attributes {stable_mosaic.version = 11 : i64} {
  func.func @_doc_classifier_kernel(%arg0: i32, %arg1: memref<16x8xf32, #tpu.memory_space<vmem>>, %arg2: memref<16x256xf32, #tpu.memory_space<vmem>>, %arg3: memref<8x256xf32, #tpu.memory_space<vmem>>, %arg4: memref<256x4xf32, #tpu.memory_space<vmem>>, %arg5: memref<1x4xf32, #tpu.memory_space<vmem>>, %arg6: memref<16x4xf32, #tpu.memory_space<vmem>>) attributes {dimension_semantics = [#tpu.dimension_semantics<parallel>], iteration_bounds = array<i64: 1>, scalar_prefetch = 0 : i64, scratch_operands = 0 : i64, tpu.core_type = #tpu.core_type<tc>, window_params = [{transform_indices = @transform_0, window_bounds = array<i64: 16, 8>}, {transform_indices = @transform_1, window_bounds = array<i64: 16, 256>}, {pipeline_mode = #tpu.pipeline_mode<synchronous>, transform_indices = @transform_2, window_bounds = array<i64: 8, 256>}, {pipeline_mode = #tpu.pipeline_mode<synchronous>, transform_indices = @transform_3, window_bounds = array<i64: 256, 4>}, {pipeline_mode = #tpu.pipeline_mode<synchronous>, transform_indices = @transform_4, window_bounds = array<i64: 1, 4>}, {transform_indices = @transform_5, window_bounds = array<i64: 16, 4>}]} {
    %c0 = arith.constant 0 : index
    %c0_0 = arith.constant 0 : index
    %0 = vector.load %arg1[%c0, %c0_0] : memref<16x8xf32, #tpu.memory_space<vmem>>, vector<16x8xf32>
    %c0_1 = arith.constant 0 : index
    %c0_2 = arith.constant 0 : index
    %1 = vector.load %arg2[%c0_1, %c0_2] : memref<16x256xf32, #tpu.memory_space<vmem>>, vector<16x256xf32>
    %c0_3 = arith.constant 0 : index
    %c0_4 = arith.constant 0 : index
    %2 = vector.load %arg3[%c0_3, %c0_4] : memref<8x256xf32, #tpu.memory_space<vmem>>, vector<8x256xf32>
    %c0_5 = arith.constant 0 : index
    %c0_6 = arith.constant 0 : index
    %3 = vector.load %arg4[%c0_5, %c0_6] : memref<256x4xf32, #tpu.memory_space<vmem>>, vector<256x4xf32>
    %c0_7 = arith.constant 0 : index
    %c0_8 = arith.constant 0 : index
    %4 = vector.load %arg5[%c0_7, %c0_8] : memref<1x4xf32, #tpu.memory_space<vmem>>, vector<1x4xf32>
    %cst = arith.constant dense<0.000000e+00> : vector<16x256xf32>
    %5 = tpu.matmul %0, %2, %cst {dimension_numbers = #tpu.dot_dimension_numbers<[1], [0], [0], [1], [0, 0, 1, 1], [], []>} : vector<16x8xf32>, vector<8x256xf32>, vector<16x256xf32> -> vector<16x256xf32>
    %6 = arith.mulf %5, %1 : vector<16x256xf32>
    %cst_9 = arith.constant dense<0.000000e+00> : vector<16x4xf32>
    %7 = tpu.matmul %6, %3, %cst_9 {dimension_numbers = #tpu.dot_dimension_numbers<[1], [0], [0], [1], [0, 0, 1, 1], [], []>} : vector<16x256xf32>, vector<256x4xf32>, vector<16x4xf32> -> vector<16x4xf32>
    %cst_10 = arith.constant dense<0.000000e+00> : vector<16xf32>
    %8 = vector.multi_reduction <add>, %0, %cst_10 [1] : vector<16x8xf32> to vector<16xf32>
    %9 = vector.shape_cast %8 : vector<16xf32> to vector<16x1xf32>
    %10 = tpu.reciprocal %9 : vector<16x1xf32> -> vector<16x1xf32>
    %11 = vector.broadcast %10 : vector<16x1xf32> to vector<16x4xf32>
    %12 = arith.mulf %7, %11 : vector<16x4xf32>
    %13 = vector.broadcast %4 : vector<1x4xf32> to vector<16x4xf32>
    %14 = arith.addf %12, %13 : vector<16x4xf32>
    %15 = arith.negf %14 : vector<16x4xf32>
    %16 = math.exp %15 : vector<16x4xf32>
    %cst_11 = arith.constant 1.000000e+00 : f32
    %17 = vector.broadcast %cst_11 : f32 to vector<16x4xf32>
    %18 = arith.addf %17, %16 : vector<16x4xf32>
    %19 = arith.divf %17, %18 : vector<16x4xf32>
    %c0_12 = arith.constant 0 : index
    %c0_13 = arith.constant 0 : index
    %20 = vector.load %arg6[%c0_12, %c0_13] : memref<16x4xf32, #tpu.memory_space<vmem>>, vector<16x4xf32>
    tpu.vector_store %arg6[%c0_12, %c0_13], %19 {strides = array<i32>} : memref<16x4xf32, #tpu.memory_space<vmem>>, vector<16x4xf32>,
    return
  }
  func.func @transform_0(%arg0: i32) -> (i32, i32) {
    %c0_i32 = arith.constant 0 : i32
    %c0_i32_0 = arith.constant 0 : i32
    return %arg0, %c0_i32 : i32, i32
  }
  func.func @transform_1(%arg0: i32) -> (i32, i32) {
    %c0_i32 = arith.constant 0 : i32
    %c0_i32_0 = arith.constant 0 : i32
    return %arg0, %c0_i32 : i32, i32
  }
  func.func @transform_2(%arg0: i32) -> (i32, i32) {
    %c0_i32 = arith.constant 0 : i32
    %c0_i32_0 = arith.constant 0 : i32
    %c0_i32_1 = arith.constant 0 : i32
    return %c0_i32, %c0_i32_0 : i32, i32
  }
  func.func @transform_3(%arg0: i32) -> (i32, i32) {
    %c0_i32 = arith.constant 0 : i32
    %c0_i32_0 = arith.constant 0 : i32
    %c0_i32_1 = arith.constant 0 : i32
    return %c0_i32, %c0_i32_0 : i32, i32
  }
  func.func @transform_4(%arg0: i32) -> (i32, i32) {
    %c0_i32 = arith.constant 0 : i32
    %c0_i32_0 = arith.constant 0 : i32
    %c0_i32_1 = arith.constant 0 : i32
    return %c0_i32, %c0_i32_0 : i32, i32
  }
  func.func @transform_5(%arg0: i32) -> (i32, i32) {
    %c0_i32 = arith.constant 0 : i32
    %c0_i32_0 = arith.constant 0 : i32
    return %arg0, %c0_i32 : i32, i32
  }
}

</mosaic_0001>

<bundles_post_ra>
// kernel: tpu_custom_call.1
= control target key start
LH: loop header
LB: loop body
LE: loop exit
PB: predicated region body
PF: predicated region fallthrough
CT: control target
= control target key end

     0   :  { %v365_v2 = vmov 0.0   ;;  %vm61_vm0 = vcmask 64512   ;;  %vm254_vm1 = vcmask 31744   ;;  %s537_s2 = inlined_call_operand.vmem [shape: f32[8,256], index: 2, kind: input, shape index: {}]   ;;  %s538_s0 = inlined_call_operand.vmem [shape: f32[16,8], index: 0, kind: input, shape index: {}]   ;;  %s539_s3 = inlined_call_operand.vmem [shape: f32[256,4], index: 3, kind: input, shape index: {}]   ;;  %s540_s1 = inlined_call_operand.vmem [shape: f32[16,256], index: 1, kind: input, shape index: {}]   ;;  %s541_s4 = inlined_call_operand.vmem [shape: f32[1,4], index: 4, kind: input, shape index: {}]   ;;  %s542_s5 = inlined_call_operand.vmem [shape: f32[16,4], index: 5, kind: output, shape index: {}]  }
   0x1   :  { %v27_v0 = vld [vmem:[%s537_s2 + $0x8] sm:$0xff]  ;;  %v26_v1 = vld [vmem:[%s537_s2] sm:$0xff]  ;;  %132 = vmatprep.mubr.f32.mxu0 %v365_v2  ;;  %v46_v9 = vld [vmem:[%s539_s3 + $0x90] sm:$0xff] }
   0x2   :  { %v405_v3 = vld [vmem:[%s538_s0] sm:$0xff]  ;;  %68 = vmatprep.subr.mxu0 %v27_v0  ;;  %v45_v5 = vld [vmem:[%s539_s3 + $0x88] sm:$0xff]  ;;  %v47_v11 = vld [vmem:[%s539_s3 + $0x98] sm:$0xff] }
   0x3   :  { %v44_v4 = vld [vmem:[%s539_s3 + $0x80] sm:$0xff]  ;;  %69 = vmatpush1.msra.mxu0 %v26_v1  ;;  %v29_v8 = vld [vmem:[%s539_s3 + $0x8] sm:$0xff]  ;;  %v30_v12 = vld [vmem:[%s539_s3 + $0x10] sm:$0xff]  ;;  %v308_v15 = vpack.c.bf16 %v47_v11, %v46_v9  ;;  %v224_v53 = vsel %vm61_vm0, %v405_v3, 0.0 }
   0x4   :  { %v304_v6 = vpack.c.bf16 %v45_v5, %v44_v4  ;;  %v28_v7 = vld [vmem:[%s539_s3] sm:$0xff]  ;;  %261 = vmatmul.mubr.msk.f32.vlgmr.msra.gmra.mrb[0].mxu0 %vm61_vm0, %v405_v3  ;;  %v31_v13 = vld [vmem:[%s539_s3 + $0x18] sm:$0xff]  ;;  %v436_v14 = vld [vmem:[%s538_s0 + $0x8] sm:$0xff]  ;;  %225 = vadd.xlane.f32.xlu0 %v224_v53 }
   0x5   :  { %v306_v10 = vpack.c.bf16 %v29_v8, %v28_v7  ;;  %138 = vmatprep.mubr.f32.mxu0 %v365_v2  ;;  %v48_v16 = vld [vmem:[%s539_s3 + $0xa0] sm:$0xff]  ;;  %v49_v17 = vld [vmem:[%s539_s3 + $0xa8] sm:$0xff]  ;;  %v310_v18 = vpack.c.bf16 %v31_v13, %v30_v12  ;;  %v50_v22 = vld [vmem:[%s539_s3 + $0xb0] sm:$0xff]  ;;  %v227_v54 = vsel %vm61_vm0, %v436_v14, 0.0 }
   0x6   :  { %305 = vmatprep.subr.bf16.mxu0 %v304_v6  ;;  %336 = vmatprep.subr.bf16.mxu1 %v304_v6  ;;  %v312_v19 = vpack.c.bf16 %v49_v17, %v48_v16  ;;  %v32_v20 = vld [vmem:[%s539_s3 + $0x20] sm:$0xff]  ;;  %v33_v21 = vld [vmem:[%s539_s3 + $0x28] sm:$0xff]  ;;  %v51_v23 = vld [vmem:[%s539_s3 + $0xb8] sm:$0xff] }
   0x7   :  { %307 = vmatpush3.bf16.msra.mxu0 %v306_v10  ;;  %344 = vmatpush3.bf16.msra.mxu1 %v306_v10  ;;  %v314_v24 = vpack.c.bf16 %v33_v21, %v32_v20  ;;  %v316_v25 = vpack.c.bf16 %v51_v23, %v50_v22  ;;  %v34_v26 = vld [vmem:[%s539_s3 + $0x30] sm:$0xff]  ;;  %v35_v27 = vld [vmem:[%s539_s3 + $0x38] sm:$0xff]  ;;  %v52_v28 = vld [vmem:[%s539_s3 + $0xc0] sm:$0xff] }
   0x8   :  { %309 = vmatprep.subr.bf16.mxu0 %v308_v15  ;;  %262 = vmatmul.mubr.msk.f32.gmra.mrb[2].mxu0 %vm61_vm0, %v436_v14  ;;  %v53_v29 = vld [vmem:[%s539_s3 + $0xc8] sm:$0xff]  ;;  %v318_v30 = vpack.c.bf16 %v35_v27, %v34_v26  ;;  %v36_v32 = vld [vmem:[%s539_s3 + $0x40] sm:$0xff]  ;;  %v54_v34 = vld [vmem:[%s539_s3 + $0xd0] sm:$0xff] }
   0x9   :  { %337 = vmatprep.subr.bf16.mxu1 %v308_v15  ;;  %v320_v31 = vpack.c.bf16 %v53_v29, %v52_v28  ;;  %v37_v33 = vld [vmem:[%s539_s3 + $0x48] sm:$0xff]  ;;  %v55_v35 = vld [vmem:[%s539_s3 + $0xd8] sm:$0xff]  ;;  %v38_v38 = vld [vmem:[%s539_s3 + $0x50] sm:$0xff]  ;;  %228 = vadd.xlane.f32.xlu0 %v227_v54 }
   0xa   :  { %v322_v36 = vpack.c.bf16 %v37_v33, %v36_v32  ;;  %v324_v37 = vpack.c.bf16 %v55_v35, %v54_v34  ;;  %v39_v39 = vld [vmem:[%s539_s3 + $0x58] sm:$0xff]  ;;  %v56_v40 = vld [vmem:[%s539_s3 + $0xe0] sm:$0xff]  ;;  %v57_v41 = vld [vmem:[%s539_s3 + $0xe8] sm:$0xff] }
   0xb   :  { %311 = vmatpush3.bf16.msra.mxu0 %v310_v18  ;;  %345 = vmatpush3.bf16.msra.mxu1 %v310_v18  ;;  %v326_v42 = vpack.c.bf16 %v39_v39, %v38_v38  ;;  %v328_v43 = vpack.c.bf16 %v57_v41, %v56_v40  ;;  %v40_v44 = vld [vmem:[%s539_s3 + $0x60] sm:$0xff]  ;;  %v41_v45 = vld [vmem:[%s539_s3 + $0x68] sm:$0xff]  ;;  %v58_v47 = vld [vmem:[%s539_s3 + $0xf0] sm:$0xff] }
   0xc   :  { %313 = vmatprep.subr.bf16.mxu0 %v312_v19  ;;  %338 = vmatprep.subr.bf16.mxu1 %v312_v19  ;;  %v330_v46 = vpack.c.bf16 %v41_v45, %v40_v44  ;;  %v59_v48 = vld [vmem:[%s539_s3 + $0xf8] sm:$0xff]  ;;  %v42_v50 = vld [vmem:[%s539_s3 + $0x70] sm:$0xff]  ;;  %v23_v55 = vld [vmem:[%s540_s1 + $0x8] sm:$0xff] }
   0xd   :  { %v332_v49 = vpack.c.bf16 %v59_v48, %v58_v47  ;;  %v43_v51 = vld [vmem:[%s539_s3 + $0x78] sm:$0xff]  ;;  %v22_v56 = vld [vmem:[%s540_s1] sm:$0xff]  ;;  %v24_v62 = vld [vmem:[%s540_s1 + $0x10] sm:$0xff] }
   0xe   :  { %v334_v52 = vpack.c.bf16 %v43_v51, %v42_v50  ;;  %v25_v61 = vld [vmem:[%s540_s1 + $0x18] sm:$0xff]  ;;  %v263_v9 = vld [vmem:[%s541_s4] ss:$0 sm:$0xff] }
   0xf   :  { %315 = vmatpush3.bf16.msra.mxu0 %v314_v24  ;;  %346 = vmatpush3.bf16.msra.mxu1 %v314_v24 }
  0x10   :  { %317 = vmatprep.subr.bf16.mxu0 %v316_v25  ;;  %339 = vmatprep.subr.bf16.mxu1 %v316_v25 }
  0x13   :  { %319 = vmatpush3.bf16.msra.mxu0 %v318_v30  ;;  %347 = vmatpush3.bf16.msra.mxu1 %v318_v30 }
  0x14   :  { %321 = vmatprep.subr.bf16.mxu0 %v320_v31  ;;  %340 = vmatprep.subr.bf16.mxu1 %v320_v31 }
  0x17   :  { %323 = vmatpush3.bf16.msra.mxu0 %v322_v36  ;;  %348 = vmatpush3.bf16.msra.mxu1 %v322_v36 }
  0x18   :  { %325 = vmatprep.subr.bf16.mxu0 %v324_v37  ;;  %341 = vmatprep.subr.bf16.mxu1 %v324_v37 }
  0x1b   :  { %327 = vmatpush3.bf16.msra.mxu0 %v326_v42  ;;  %349 = vmatpush3.bf16.msra.mxu1 %v326_v42 }
  0x1c   :  { %329 = vmatprep.subr.bf16.mxu0 %v328_v43  ;;  %342 = vmatprep.subr.bf16.mxu1 %v328_v43 }
  0x1f   :  { %331 = vmatpush3.bf16.msra.mxu0 %v330_v46  ;;  %350 = vmatpush3.bf16.msra.mxu1 %v330_v46 }
  0x20   :  { %333 = vmatprep.subr.bf16.mxu0 %v332_v49  ;;  %343 = vmatprep.subr.bf16.mxu1 %v332_v49 }
  0x23   :  { %335 = vmatpush3.bf16.msra.mxu0 %v334_v52  ;;  %351 = vmatpush3.bf16.msra.mxu1 %v334_v52 }
  0x91   :  { %v226_v3 = vpop.xlane.xlu0 %225 }
  0x92   :  { %353 = vrcp.f32 %v226_v3 }
  0x96   :  { %v229_v4 = vpop.xlane.xlu0 %228 }
  0x97   :  { %355 = vrcp.f32 %v229_v4 }
  0x9c   :  { %v354_v6 = vpop.eup %353 }
  0xa1   :  { %v356_v12 = vpop.eup %355 }
  0xd7   :  { %v134_v57 = vpop.f32.mrb[0].mxu0 }
  0xd8   :  { %v136_v58 = vpop.f32.mrb[1].mxu0  ;;  %v145_v60 = vmul.f32 %v134_v57, %v22_v56 }
  0xd9   :  { %v146_v59 = vmul.f32 %v136_v58, %v23_v55 }
  0xdb   :  { %v140_v63 = vpop.f32.mrb[2].mxu0  ;;  %213 = vmatprep.mubr.f32.mxu0 %v146_v59 }
  0xdc   :  { %v142_v0 = vpop.f32.mrb[3].mxu0  ;;  %214 = vmatmul.mubr.f32.vlgmr.msra.gmra.mrb[4].mxu0 %v145_v60  ;;  %v147_v2 = vmul.f32 %v140_v63, %v24_v62 }
  0xdd   :  { %v148_v1 = vmul.f32 %v142_v0, %v25_v61 }
  0xdf   :  { %218 = vmatprep.mubr.f32.mxu1 %v148_v1 }
  0xe0   :  { %219 = vmatmul.mubr.f32.vlgmr.msra.gmra.mrb[0].mxu1 %v147_v2 }
 0x1af   :  { %v298_v5 = vpop.f32.mrb[4].mxu0 }
 0x1b0   :  { %v299_v7 = vpop.f32.mrb[5].mxu0 }
 0x1b1   :  { %v300_v8 = vadd.f32 %v299_v7, %v298_v5 }
 0x1b3   :  { %v232_v10 = vmul.f32 %v354_v6, %v300_v8  ;;  %v301_v11 = vpop.f32.mrb[0].mxu1 }
 0x1b4   :  { %v302_v13 = vpop.f32.mrb[1].mxu1 }
 0x1b5   :  { %v240_v14 = vadd.f32 %v263_v9, %v232_v10  ;;  %v303_v15 = vadd.f32 %v302_v13, %v301_v11 }
 0x1b7   :  { %v264_v16 = vmul.f32 -1.442695, %v240_v14  ;;  %v233_v17 = vmul.f32 %v356_v12, %v303_v15 }
 0x1b9   :  { %357 = vpow2.f32 %v264_v16  ;;  %v241_v18 = vadd.f32 %v263_v9, %v233_v17 }
 0x1bb   :  { %v265_v19 = vmul.f32 -1.442695, %v241_v18 }
 0x1bd   :  { %359 = vpow2.f32 %v265_v19 }
 0x1c3   :  { %v358_v20 = vpop.eup %357 }
 0x1c4   :  { %v248_v21 = vadd.f32 1.0, %v358_v20 }
 0x1c6   :  { %361 = vrcp.f32 %v248_v21 }
 0x1c7   :  { %v360_v22 = vpop.eup %359 }
 0x1c8   :  { %v249_v23 = vadd.f32 1.0, %v360_v22 }
 0x1ca   :  { %363 = vrcp.f32 %v249_v23 }
 0x1d0   :  { %v362_v24 = vpop.eup %361 }
 0x1d1   :  { %255 = vst.msk [vmem:[%s542_s5] sm:$0xff] %vm254_vm1, %v362_v24 }
 0x1d4   :  { %v364_v25 = vpop.eup %363 }
 0x1d5   :  { %256 = vst.msk [vmem:[%s542_s5 + $0x8] sm:$0xff] %vm254_vm1, %v364_v25 }

</bundles_post_ra>
